<compile_context>
chip_gen: v7x
topology: tpu7x:2x2x1
jax: 0.10.0
libtpu: 0.0.40
codegen_flags: <defaults>
</compile_context>

<pallas_src>
import functools

import jax
import jax.numpy as jnp
import numpy as np
from jax.experimental import pallas as pl
from jax.experimental.pallas import tpu as pltpu

EXPANSION = 4
_BN_EPS = 1e-5
_LANE = 128
_SUBLANE = 16          # bf16 sublane packing


def _round_up(v, m):
    return ((v + m - 1) // m) * m


# -----------------------------------------------------------------------------
# Generation-aware VMEM budget
# -----------------------------------------------------------------------------
@functools.lru_cache(maxsize=None)
def _vmem_limits():
    cap = 64 * 1024 * 1024                      # conservative fallback (v7x)
    try:
        c = int(pltpu.get_tpu_info().vmem_capacity_bytes)
        if c > 0:
            cap = c
    except Exception:                            # query can fail off-TPU
        pass
    # ~96 MiB scoped limit on 128 MiB parts (v5e/v6e), ~48 MiB on v7x.
    vmem_limit = min(cap, max(32 * 1024 * 1024, cap * 3 // 4))
    budget = max(16 * 1024 * 1024, vmem_limit - 6 * 1024 * 1024)  # headroom
    return budget, vmem_limit


def _pick_tiles(m_p, k_p, cout_p, has_res, out_itemsize, budget):
    """Choose (tm, tk): lane tile (multiple of 128 dividing m_p) and K tile."""
    bf = 2  # bf16 bytes
    # K tile: keep double-buffered weight blocks within ~1/3 of the budget.
    if 2 * cout_p * k_p * bf <= budget // 3:
        tk = k_p
    else:
        tk = max(_LANE, (budget // 3) // (2 * cout_p * bf) // _LANE * _LANE)
        tk = min(tk, _round_up(k_p, _LANE))
    multi_k = tk < k_p

    w_bytes = 2 * cout_p * tk * bf
    per_col = (2 * tk * bf                               # activations (dbl buf)
               + (2 * cout_p * bf if has_res else 0)     # residual    (dbl buf)
               + 2 * cout_p * out_itemsize               # output      (dbl buf)
               + (cout_p * 4 if multi_k else 0))         # f32 accumulator
    avail = max(budget - w_bytes, per_col * _LANE)
    tm = max(_LANE, (avail // per_col) // _LANE * _LANE)
    tm = min(tm, 4096, m_p)
    # Keep >= 4 steps on the parallel axis (v7x dual TCs / pipelining overlap).
    if m_p >= 4 * _LANE:
        tm = min(tm, max(_LANE, (m_p // 4) // _LANE * _LANE))
    while m_p % tm:
        tm -= _LANE
    return tm, tk


# -----------------------------------------------------------------------------
# Fused  y = act(W @ X + shift [+ residual])  Pallas kernel
# -----------------------------------------------------------------------------
def _make_kernel(apply_relu, has_residual, multi_k):
    def kernel(w_ref, x_ref, shift_ref, *rest):
        if multi_k:
            if has_residual:
                res_ref, o_ref, acc_ref = rest
            else:
                o_ref, acc_ref = rest

            @pl.when(pl.program_id(1) == 0)
            def _():
                acc_ref[...] = jnp.zeros_like(acc_ref)

            acc_ref[...] += jnp.dot(w_ref[...], x_ref[...],
                                    preferred_element_type=jnp.float32)

            @pl.when(pl.program_id(1) == pl.num_programs(1) - 1)
            def _():
                y = acc_ref[...] + shift_ref[...]
                if has_residual:
                    y = y + res_ref[...].astype(jnp.float32)
                if apply_relu:
                    y = jnp.maximum(y, 0.0)
                o_ref[...] = y.astype(o_ref.dtype)
        else:
            if has_residual:
                res_ref, o_ref = rest
            else:
                (o_ref,) = rest
            y = jnp.dot(w_ref[...], x_ref[...],
                        preferred_element_type=jnp.float32) + shift_ref[...]
            if has_residual:
                y = y + res_ref[...].astype(jnp.float32)
            if apply_relu:
                y = jnp.maximum(y, 0.0)
            o_ref[...] = y.astype(o_ref.dtype)

    return kernel


def fused_conv_bn(w, x_cm, shift, residual=None, *, out_dtype=jnp.bfloat16,
                  apply_relu=True):
    """y[c, m] = act(sum_k w[c,k] * x[k,m] + shift[c] (+ res[c,m])).

    `x_cm` must already be channel-padded (rows, zero filled) and lane-padded
    (cols multiple of 128); it is consumed as bf16.  BN scale is expected to be
    pre-folded into `w`.  Returns the padded (cout_p, m_p) result so downstream
    stages can reuse it without re-padding.
    """
    cout, kdim = w.shape
    k_p, m_p = x_cm.shape
    assert kdim <= k_p and k_p % 8 == 0 and m_p % _LANE == 0
    cout_p = _round_up(cout, _SUBLANE)
    has_res = residual is not None

    budget, vmem_limit = _vmem_limits()
    out_isz = int(np.dtype(out_dtype).itemsize)
    tm, tk = _pick_tiles(m_p, k_p, cout_p, has_res, out_isz, budget)

    f32, bf16 = jnp.float32, jnp.bfloat16
    w_p = (jnp.zeros((cout_p, k_p), f32).at[:cout, :kdim]
           .set(w.astype(f32)).astype(bf16))
    shift_p = jnp.zeros((cout_p, 1), f32).at[:cout, 0].set(shift.astype(f32))
    x_p = x_cm.astype(bf16)

    if k_p % tk:                      # ragged K only when the reduction is tiled
        k_pp = _round_up(k_p, tk)
        w_p = jnp.pad(w_p, ((0, 0), (0, k_pp - k_p)))
        x_p = jnp.pad(x_p, ((0, k_pp - k_p), (0, 0)))
        k_p = k_pp
    n_k = k_p // tk
    multi_k = n_k > 1

    in_specs = [
        pl.BlockSpec((cout_p, tk), lambda i, k: (0, k)),   # weights
        pl.BlockSpec((tk, tm), lambda i, k: (k, i)),       # activations
        pl.BlockSpec((cout_p, 1), lambda i, k: (0, 0)),    # folded BN shift
    ]
    args = [w_p, x_p, shift_p]
    if has_res:
        assert residual.shape == (cout_p, m_p), (residual.shape, cout_p, m_p)
        in_specs.append(pl.BlockSpec((cout_p, tm), lambda i, k: (0, i)))
        args.append(residual.astype(bf16))

    scratch = (pltpu.VMEM((cout_p, tm), jnp.float32),) if multi_k else ()

    bytes_accessed = (cout_p * k_p * 2 + k_p * m_p * 2
                      + cout_p * m_p * out_isz
                      + (cout_p * m_p * 2 if has_res else 0))
    cost = pl.CostEstimate(flops=2 * cout_p * k_p * m_p, transcendentals=0,
                           bytes_accessed=int(bytes_accessed))

    return pl.pallas_call(
        _make_kernel(apply_relu, has_res, multi_k),
        out_shape=jax.ShapeDtypeStruct((cout_p, m_p), out_dtype),
        grid_spec=pltpu.PrefetchScalarGridSpec(
            num_scalar_prefetch=0,
            grid=(m_p // tm, n_k),
            in_specs=in_specs,
            out_specs=pl.BlockSpec((cout_p, tm), lambda i, k: (0, i)),
            scratch_shapes=scratch,
        ),
        compiler_params=pltpu.CompilerParams(
            dimension_semantics=("parallel", "arbitrary"),
            vmem_limit_bytes=int(vmem_limit),
        ),
        cost_estimate=cost,
    )(*args)


# -----------------------------------------------------------------------------
# Layout plumbing (wrapper-side, channels-major, no transposes between stages)
# -----------------------------------------------------------------------------
def _pick_mp(m):
    if m >= 8192:
        unit = 2048
    elif m >= 512:
        unit = 512
    else:
        unit = _LANE
    return _round_up(m, unit)


def _pad2(a, rows, cols):
    r, c = a.shape
    if r == rows and c == cols:
        return a
    return jnp.pad(a, ((0, rows - r), (0, cols - c)))


def _cm_from_nchw(x):                    # (N,C,H,W) -> (C, N*H*W)
    n, c, h, w = x.shape
    return jnp.transpose(x, (1, 0, 2, 3)).reshape(c, n * h * w)


def _nchw_from_cm(y_cm, n, h, w):        # (C, N*H*W) -> (N,C,H,W)
    c = y_cm.shape[0]
    return jnp.transpose(y_cm.reshape(c, n, h, w), (1, 0, 2, 3))


def _im2col_3x3_cm(x_cm, n, h, w, m_p):
    """(C_p, >=n*h*w) -> (9*C_p, m_p), rows ordered (tap, channel)."""
    c = x_cm.shape[0]
    xs = x_cm[:, :n * h * w].reshape(c, n, h, w)
    xp = jnp.pad(xs, ((0, 0), (0, 0), (1, 1), (1, 1)))
    taps = [xp[:, :, dy:dy + h, dx:dx + w]
            for dy in range(3) for dx in range(3)]
    x9 = jnp.stack(taps, axis=0).reshape(9 * c, n * h * w)
    return _pad2(x9, 9 * c, m_p)


def _avg_pool_cm(x_cm, n, h, w, s):
    """AvgPool2d(s) (kernel=stride=s, no padding, floor) channels-major."""
    if s == 1:
        return x_cm, h, w
    c = x_cm.shape[0]
    hs, ws = h // s, w // s
    xs = x_cm[:, :n * h * w].reshape(c, n, h, w)[:, :, :hs * s, :ws * s]
    xs = xs.reshape(c, n, hs, s, ws, s).astype(jnp.float32)
    pooled = xs.mean(axis=(3, 5)).astype(x_cm.dtype).reshape(c, n * hs * ws)
    return pooled, hs, ws


def _bn_fold(bn, eps=_BN_EPS):
    scale = bn["gamma"] / jnp.sqrt(bn["var"] + eps)
    shift = bn["beta"] - bn["mean"] * scale
    return scale.astype(jnp.float32), shift.astype(jnp.float32)


# -----------------------------------------------------------------------------
# Bottleneck parameters + forward (Pallas) + pure-JAX reference
# -----------------------------------------------------------------------------
def init_bottleneck_params(key, inplanes, planes, stride, dtype=jnp.float32):
    keys = jax.random.split(key, 8)

    def conv_w(k, cout, cin, ksz):
        fan_in = cin * ksz * ksz
        return (jax.random.normal(k, (cout, cin, ksz, ksz), dtype)
                * (1.0 / np.sqrt(fan_in)))

    def bn(k, c):
        k1, k2, k3, k4 = jax.random.split(k, 4)
        return dict(
            gamma=1.0 + 0.1 * jax.random.normal(k1, (c,), dtype),
            beta=0.1 * jax.random.normal(k2, (c,), dtype),
            mean=0.1 * jax.random.normal(k3, (c,), dtype),
            var=jnp.abs(jax.random.normal(k4, (c,), dtype)) + 0.5,
        )

    params = dict(
        conv1=conv_w(keys[0], planes, inplanes, 1), bn1=bn(keys[1], planes),
        conv2=conv_w(keys[2], planes, planes, 3), bn2=bn(keys[3], planes),
        conv3=conv_w(keys[4], planes * EXPANSION, planes, 1),
        bn3=bn(keys[5], planes * EXPANSION),
        stride=stride,
    )
    if stride > 1 or inplanes != planes * EXPANSION:
        params["down_conv"] = conv_w(keys[6], planes * EXPANSION, inplanes, 1)
        params["down_bn"] = bn(keys[7], planes * EXPANSION)
    return params


def bottleneck_forward(params, x):
    n, cin, h, w = x.shape
    stride = params["stride"]
    bf16 = jnp.bfloat16
    f32 = jnp.float32
    m = n * h * w

    cin_p = _round_up(cin, _SUBLANE)
    m_p = _pick_mp(m)
    # channels-major, bf16, padded ONCE; reused by conv1 and the identity path
    x_cm = _pad2(_cm_from_nchw(x).astype(bf16), cin_p, m_p)

    # conv1 (1x1) + bn1 + relu
    s1, b1 = _bn_fold(params["bn1"])
    w1 = params["conv1"][:, :, 0, 0].astype(f32) * s1[:, None]
    out1 = fused_conv_bn(w1, x_cm, b1, out_dtype=bf16, apply_relu=True)

    # conv2 (3x3, pad=1) + bn2 + relu via channels-major im2col (see TODO)
    s2, b2 = _bn_fold(params["bn2"])
    cout2, cin2 = params["conv2"].shape[:2]
    cin2_p = _round_up(cin2, _SUBLANE)
    w2 = params["conv2"].astype(f32) * s2[:, None, None, None]
    w2 = jnp.transpose(w2, (0, 2, 3, 1)).reshape(cout2, 9, cin2)
    w2 = (jnp.zeros((cout2, 9, cin2_p), f32).at[:, :, :cin2].set(w2)
          .reshape(cout2, 9 * cin2_p))
    x9 = _im2col_3x3_cm(out1, n, h, w, m_p)
    out2 = fused_conv_bn(w2, x9, b2, out_dtype=bf16, apply_relu=True)

    # avgpool (Identity when stride == 1), staying channels-major
    out2p, hp, wp = _avg_pool_cm(out2, n, h, w, stride)
    m_pool = n * hp * wp
    m_pool_p = _pick_mp(m_pool)
    out2p = _pad2(out2p, out2p.shape[0], m_pool_p)

    # identity / downsample branch
    if "down_conv" in params:
        sd, bd = _bn_fold(params["down_bn"])
        wd = params["down_conv"][:, :, 0, 0].astype(f32) * sd[:, None]
        x_pool, _, _ = _avg_pool_cm(x_cm, n, h, w, stride)
        x_pool = _pad2(x_pool, cin_p, m_pool_p)
        identity = fused_conv_bn(wd, x_pool, bd, out_dtype=bf16,
                                 apply_relu=False)
    else:
        identity = x_cm            # inplanes == planes*4, stride == 1

    # conv3 (1x1) + bn3 + residual add + final relu — fully fused
    s3, b3 = _bn_fold(params["bn3"])
    w3 = params["conv3"][:, :, 0, 0].astype(f32) * s3[:, None]
    cout3 = params["conv3"].shape[0]
    out3 = fused_conv_bn(w3, out2p, b3, residual=identity,
                         out_dtype=x.dtype, apply_relu=True)
    return _nchw_from_cm(out3[:cout3, :m_pool], n, hp, wp)


def _avg_pool_nchw(x, s):
    if s == 1:
        return x
    n, c, h, w = x.shape
    hs, ws = h // s, w // s
    xs = x[:, :, :hs * s, :ws * s].reshape(n, c, hs, s, ws, s)
    return xs.mean(axis=(3, 5))


def bottleneck_reference(params, x):
    hi = jax.lax.Precision.HIGHEST

    def conv(v, w, pad=0):
        return jax.lax.conv_general_dilated(
            v.astype(jnp.float32), w.astype(jnp.float32),
            window_strides=(1, 1), padding=[(pad, pad), (pad, pad)],
            dimension_numbers=("NCHW", "OIHW", "NCHW"), precision=hi)

    def bn(v, p):
        s, b = _bn_fold(p)
        return v * s.reshape(1, -1, 1, 1) + b.reshape(1, -1, 1, 1)

    relu = lambda v: jnp.maximum(v, 0.0)
    stride = params["stride"]

    out = relu(bn(conv(x, params["conv1"]), params["bn1"]))
    out = relu(bn(conv(out, params["conv2"], pad=1), params["bn2"]))
    out = _avg_pool_nchw(out, stride)
    out = bn(conv(out, params["conv3"]), params["bn3"])
    if "down_conv" in params:
        identity = bn(conv(_avg_pool_nchw(x, stride), params["down_conv"]),
                      params["down_bn"])
    else:
        identity = x.astype(jnp.float32)
    return relu(out + identity).astype(x.dtype)


if __name__ == "__main__":
    key = jax.random.PRNGKey(0)
    kx, kp1, kp2 = jax.random.split(key, 3)

    # Tolerance accounts for bf16 storage / bf16 MXU passes (f32 accumulation).
    TOL = 2.5e-2

    # Config A: stride=2 -> exercises avgpool + downsample shortcut.
    x = jax.random.normal(kx, (2, 4, 16, 16), dtype=jnp.float32)
    params = init_bottleneck_params(kp1, inplanes=4, planes=2, stride=2)
    y = bottleneck_forward(params, x)
    jax.block_until_ready(y)
    y_ref = bottleneck_reference(params, x)
    assert y.shape == y_ref.shape == (2, 8, 8, 8)
    assert jnp.allclose(y, y_ref, atol=TOL, rtol=TOL), "mismatch (stride=2)"

    # Config B: stride=1, inplanes == planes*4 -> pure identity shortcut.
    x2 = jax.random.normal(kx, (2, 16, 16, 16), dtype=jnp.float32)
    params2 = init_bottleneck_params(kp2, inplanes=16, planes=4, stride=1)
    y2 = bottleneck_forward(params2, x2)
    jax.block_until_ready(y2)
    y2_ref = bottleneck_reference(params2, x2)
    assert y2.shape == y2_ref.shape == (2, 16, 16, 16)
    assert jnp.allclose(y2, y2_ref, atol=TOL, rtol=TOL), "mismatch (stride=1)"

    print("KERNEL_OK")
</pallas_src>

<mosaic_0001>
module attributes {stable_mosaic.version = 11 : i64} {
  func.func @kernel(%arg0: i32, %arg1: i32, %arg2: memref<16x16xbf16, #tpu.memory_space<vmem>>, %arg3: memref<16x128xbf16, #tpu.memory_space<vmem>>, %arg4: memref<16x1xf32, #tpu.memory_space<vmem>>, %arg5: memref<16x128xbf16, #tpu.memory_space<vmem>>) attributes {dimension_semantics = [#tpu.dimension_semantics<parallel>, #tpu.dimension_semantics<arbitrary>], iteration_bounds = array<i64: 4, 1>, scalar_prefetch = 0 : i64, scratch_operands = 0 : i64, tpu.core_type = #tpu.core_type<tc>, window_params = [{transform_indices = @transform_0, window_bounds = array<i64: 16, 16>}, {transform_indices = @transform_1, window_bounds = array<i64: 16, 128>}, {pipeline_mode = #tpu.pipeline_mode<synchronous>, transform_indices = @transform_2, window_bounds = array<i64: 16, 1>}, {transform_indices = @transform_3, window_bounds = array<i64: 16, 128>}]} {
    %c0 = arith.constant 0 : index
    %c0_0 = arith.constant 0 : index
    %0 = vector.load %arg2[%c0, %c0_0] : memref<16x16xbf16, #tpu.memory_space<vmem>>, vector<16x16xbf16>
    %c0_1 = arith.constant 0 : index
    %c0_2 = arith.constant 0 : index
    %1 = vector.load %arg3[%c0_1, %c0_2] : memref<16x128xbf16, #tpu.memory_space<vmem>>, vector<16x128xbf16>
    %cst = arith.constant dense<0.000000e+00> : vector<16x128xf32>
    %2 = tpu.matmul %0, %1, %cst {dimension_numbers = #tpu.dot_dimension_numbers<[1], [0], [0], [1], [0, 0, 1, 1], [], []>} : vector<16x16xbf16>, vector<16x128xbf16>, vector<16x128xf32> -> vector<16x128xf32>
    %c0_3 = arith.constant 0 : index
    %c0_4 = arith.constant 0 : index
    %3 = vector.load %arg4[%c0_3, %c0_4] : memref<16x1xf32, #tpu.memory_space<vmem>>, vector<16x1xf32>
    %4 = vector.broadcast %3 : vector<16x1xf32> to vector<16x128xf32>
    %5 = arith.addf %2, %4 : vector<16x128xf32>
    %cst_5 = arith.constant 0.000000e+00 : f32
    %6 = vector.broadcast %cst_5 : f32 to vector<16x128xf32>
    %7 = arith.maximumf %5, %6 : vector<16x128xf32>
    %8 = arith.truncf %7 : vector<16x128xf32> to vector<16x128xbf16>
    %c0_6 = arith.constant 0 : index
    %c0_7 = arith.constant 0 : index
    %9 = vector.load %arg5[%c0_6, %c0_7] : memref<16x128xbf16, #tpu.memory_space<vmem>>, vector<16x128xbf16>
    tpu.vector_store %arg5[%c0_6, %c0_7], %8 {strides = array<i32>} : memref<16x128xbf16, #tpu.memory_space<vmem>>, vector<16x128xbf16>,
    return
  }
  func.func @transform_0(%arg0: i32, %arg1: i32) -> (i32, i32) {
    %c0_i32 = arith.constant 0 : i32
    %c0_i32_0 = arith.constant 0 : i32
    return %c0_i32, %arg1 : i32, i32
  }
  func.func @transform_1(%arg0: i32, %arg1: i32) -> (i32, i32) {
    %c0_i32 = arith.constant 0 : i32
    return %arg1, %arg0 : i32, i32
  }
  func.func @transform_2(%arg0: i32, %arg1: i32) -> (i32, i32) {
    %c0_i32 = arith.constant 0 : i32
    %c0_i32_0 = arith.constant 0 : i32
    %c0_i32_1 = arith.constant 0 : i32
    return %c0_i32, %c0_i32_0 : i32, i32
  }
  func.func @transform_3(%arg0: i32, %arg1: i32) -> (i32, i32) {
    %c0_i32 = arith.constant 0 : i32
    %c0_i32_0 = arith.constant 0 : i32
    return %c0_i32, %arg0 : i32, i32
  }
}

</mosaic_0001>

<bundles_post_ra>
// kernel: tpu_custom_call.1
= control target key start
LH: loop header
LB: loop body
LE: loop exit
PB: predicated region body
PF: predicated region fallthrough
CT: control target
= control target key end

     0   :  { %8 = vsyncpa [#allocation3], 0  ;;  %s852_s0 = inlined_call_operand.vmem [shape: bf16[16,16], index: 0, kind: input, shape index: {}]   ;;  %s853_s1 = inlined_call_operand.hbm [shape: bf16[16,512], index: 1, kind: input, shape index: {}]   ;;  %s854_s2 = inlined_call_operand.vmem [shape: f32[16,1], index: 2, kind: input, shape index: {}]   ;;  %s855_s3 = inlined_call_operand.hbm [shape: bf16[16,512], index: 3, kind: output, shape index: {}]  }
   0x1   :  { %10 = vsyncpa [#allocation3 + $0x1], 0 }
   0x2   :  { %11 = vsyncpa [#allocation4], 0 }
   0x3   :  { %13 = vsyncpa [#allocation4 + $0x1], 0  ;;  %s672_s12 = smov 0   ;;  %s674_s13 = smov 0  }
   0x4   :  { %s676_s14 = smov 0   ;;  %s678_s15 = smov 0  }
   0x5   :  { %s680_s16 = smov 0   ;;  %s682_s17 = smov 0  }
   0x6 LB: > { %s419_s18 = sadd.s32 4294967295, %s639_s17   ;;  %s420_s19 = sadd.s32 4294967294, %s639_s17   ;;  %s639_s17 = sphi %s682_s17, %s19_s17   ;;  %s635_s16 = sphi %s680_s16, %s868_s16   ;;  %s631_s15 = sphi %s678_s15, %s867_s15   ;;  %s627_s14 = sphi %s676_s14, %s866_s14   ;;  %s623_s13 = sphi %s674_s13, %s865_s13   ;;  %s619_s12 = sphi %s672_s12, %s864_s12  }
   0x7   : > { %s31_s20 = sadd.s32 1, %s635_s16  ;;  %s66_s21 = sadd.s32 1, %s627_s14 }
   0x8   : > { %p33_p0 = scmp.ge.s32.totalorder %s31_s20, 4  ;;  %p73_p1 = scmp.ne.s32.totalorder %s627_s14, %s623_s13 }
   0x9   : > { %p74_p2 = scmp.eq.s32.totalorder %s639_s17, 0  ;;  %p79_p3 = scmp.ne.s32.totalorder %s623_s13, %s619_s12 }
   0xa   : > { %s870_s20 = smov (%p33_p0, %s31_s20), 0  ;;  %p80_p5 = scmp.eq.s32.totalorder %s419_s18, 0 }
   0xb   : > { %p713_p4 = por %p74_p2, %p73_p1  ;;  %s62_s23 = ssub.s32 %s635_s16, %s870_s20 }
   0xc   : > { %p124_p6 = scmp.eq.s32.totalorder %s419_s18, 3  ;;  %p64_p7 = scmp.eq.s32.totalorder %s62_s23, 0 }
   0xd   : > { %p719_p8 = por %p80_p5, %p79_p3  ;;  %p130_p10 = scmp.eq.s32.totalorder %s420_s19, 3 }
   0xe   : > { %p723_p9 = por %p124_p6, %p73_p1  ;;  %p465_p12 = scmp.lt.s32.totalorder %s639_s17, 4 }
   0xf   : > { %s728_s26 = scalar_select %p64_p7, %s627_s14, %s66_s21  }
  0x10   : > { %s859_s25 = scalar_select %p723_p9, 1, 0 }
  0x11   : > { %p730_p11 = por %p130_p10, %p79_p3  ;;  %s160_s28 = sand.u32 1, %s627_s14  }
  0x12   : > { %s424_s29 = sshll.u32 %s160_s28, 3  ;;  %s425_s30 = sshll.u32 %s635_s16, 6 }
  0x13   : > { %s860_s27 = scalar_select %p730_p11, 1, 0 }
  0x14   : > { %s740_s6 = scalar_lea.hbm %s853_s1, %s425_s30  ;;  %s164_s7 = scalar_lea.vmem [#allocation2], %s424_s29 }
  0x15   : > { %s173_s8 = sshll.u32 %s164_s7, 4  ;;  %p746_p13 = pnand %p465_p12, %p713_p4  ;;  %s742_s8 = int_to_ptr.vmem [resolvable:$true] %s173_s8 }
  0x16   : > { %s750_s10 = scalar_lea.sflag [#allocation3], %s160_s28  ;;  %s527_s11 = scalar_lea.hbm %s740_s6, 128 }
  0x17   : > { %p528_p0 = scmp.ne.s32.totalorder %s740_s6, %s527_s11  ;;  %p529_p1 = pneg %p746_p13 }
  0x18   : > { %s532_s21 = scalar_lea.hbm %s853_s1, 512  ;;  %p533_p4 = scmp.lt.u32.totalorder %s740_s6, %s853_s1 }
  0x19   : > { %p530_p2 = pnand %p529_p1, %p528_p0  ;;  %p534_p5 = scmp.lt.u32.totalorder %s532_s21, %s527_s11 }
  0x1a   : > { %p536_p7 = scmp.lt.u32.totalorder %s527_s11, %s740_s6 }
  0x1b   : > { %p531_p3 = pneg %p530_p2  ;;  %p535_p6 = por %p534_p5, %p533_p4 }
  0x1d   : > { %p537_p10 = por %p536_p7, %p535_p6 }
  0x1f   : > { %p538_p12 = pnand %p537_p10, %p531_p3 }
  0x21   : > { %541 = shalt.err (!%p538_p12)
}
  0x22   : > { %s542_s28 = scalar_lea.vmem %s742_s8, 128  ;;  %s641_s29 = smov [#allocation2]  }
  0x23   : > { %p543_p0 = scmp.ne.s32.totalorder %s742_s8, %s542_s28  ;;  %s547_s30 = sshll.u32 %s641_s29, 4  ;;  %s548_s30 = int_to_ptr.vmem [resolvable:$false] %s547_s30 }
  0x24   : > { %s549_s4 = scalar_lea.vmem %s548_s30, 256  ;;  %p550_p9 = scmp.lt.s32.totalorder %s742_s8, %s548_s30 }
  0x25   : > { %p545_p2 = pnand %p543_p0, %p529_p1  ;;  %p551_p4 = scmp.lt.s32.totalorder %s549_s4, %s542_s28 }
  0x27   : > { %p546_p11 = pneg %p545_p2  ;;  %p552_p5 = por %p551_p4, %p550_p9 }
  0x29   : > { %p553_p6 = pnand %p552_p5, %p546_p11 }
  0x2b   : > { %556 = shalt.err (!%p553_p6)
}
  0x2c   : > { %s642_s5 = smov 256   ;;  %s643_s7 = smov 64  }
  0x2d   : > { %s644_s11 = smov 4   ;;  %p426_p1 = scmp.ge.s32.totalorder %s639_s17, 1 }
  0x2e   : > { %460 = dma.hbm_to_vmem [thread:$0]  (!%p746_p13), %s740_s6, 128, %s742_s8, %s750_s10, %s642_s5, %s643_s7, %s644_s11  }
  0x2f   : > { %p181_p3 = scmp.lt.s32.totalorder %s639_s17, 5 }
  0x31   : > { %p182_p7 = pnand %p426_p1, %p181_p3 }
  0x32   : > { %s781_s18 = sand.u32 (!%p182_p7), 1, %s623_s13  }
  0x33   : > { %185 = sbr.rel (%p182_p7) target bundleno = 300 (0x12c), region = 32  ;;  %s427_s19 = sshll.u32 (!%p182_p7), %s781_s18, 3 }
  0x34   : > { %s188_s21 = scalar_lea.sflag (!%p182_p7), [#allocation3], %s781_s18  ;;  %s191_s22 = scalar_lea.vmem (!%p182_p7), [#allocation2], %s427_s19 }
  0x3a   : > { %610 = dma.done.wait (%p719_p8), %s188_s21, 128  }
  0x3b   : > { %612 = vsyncadd (%p719_p8), %s188_s21, 4294967168  ;;  %v645_v0 = vmov 0.0   ;;  %vm646_vm0 = vmmov 0   ;;  %v647_v1 = vmov 0   ;;  %v525_v2 = vld [vmem:[%s191_s22] sm:$0xff]   ;;  %vm251_vm1 = vcmask 130048  }
  0x3c   : > { %447 = vmatprep.subr.bf16.mxu0 %v645_v0  ;;  %449 = vmatprep.mubr.msk.bf16.mxu0 %vm646_vm0, %v645_v0  ;;  %v526_v3 = vld [vmem:[%s852_s0] sm:$0xff]   ;;  %v229_v5 = vld [vmem:[%s854_s2 + $0x8] sm:$0xff]  ;;  %s217_s28 = scalar_lea.vmem [#allocation5], %s427_s19  ;;  %s435_s30 = sshll.u32 %s631_s15, 6 }
  0x3d   : > { %524 = vset.pattern.permute.xlu0 %v647_v1  ;;  %448 = vmatpush3.bf16.msra.mxu0 %v525_v2  ;;  %v228_v4 = vld [vmem:[%s854_s2] sm:$0xff]  ;;  %s321_s29 = sshll.u32 %s217_s28, 4  ;;  %s804_s7 = scalar_lea.hbm %s855_s3, %s435_s30  ;;  %s799_s29 = int_to_ptr.vmem [resolvable:$true] %s321_s29 }
  0x3e   : > { %232 = vperm.xlu0 %524, %v228_v4   ;;  %s309_s11 = scalar_lea.sflag [#allocation4], %s781_s18  ;;  %s557_s19 = scalar_lea.vmem %s799_s29, 128 }
  0x3f   : > { %p558_p8 = scmp.ne.s32.totalorder %s799_s29, %s557_s19  ;;  %p862_p9 = scmp.ne.s32.totalorder %s859_s25, 0 }
  0x40   : > { %450 = vmatmul.mubr.msk.bf16.vlgmr.msra.gmra.mrb[0].mxu0 %vm251_vm1, %v526_v3  ;;  %s648_s15 = smov [#allocation5]  }
  0x41   : > { %p559_p11 = pnand %p558_p8, %p862_p9  ;;  %s561_s21 = sshll.u32 %s648_s15, 4  ;;  %s562_s21 = int_to_ptr.vmem [resolvable:$false] %s561_s21 }
  0x42   : > { %237 = vperm.xlu0 %524, %v229_v5   ;;  %s563_s22 = scalar_lea.vmem %s562_s21, 256  ;;  %p564_p10 = scmp.lt.s32.totalorder %s799_s29, %s562_s21 }
  0x43   : > { %p560_p13 = pneg %p559_p11  ;;  %p565_p12 = scmp.lt.s32.totalorder %s563_s22, %s557_s19 }
  0x45   : > { %p566_p0 = por %p565_p12, %p564_p10 }
  0x47   : > { %p567_p2 = pnand %p566_p0, %p560_p13 }
  0xbd   : > { %v233_v6 = vpop.permute.xlu0 %232 }
  0xc1   : > { %v238_v10 = vpop.permute.xlu0 %237 }
 0x113   : > { %v289_v7 = vpop.f32.mrb[0].mxu0 }
 0x114   : > { %v290_v8 = vadd.f32 %v289_v7, %v233_v6  ;;  %v451_v9 = vpop.f32.mrb[1].mxu0 }
 0x115   : > { %v292_v11 = vpop.f32.mrb[2].mxu0 }
 0x116   : > { %v293_v12 = vadd.f32 %v292_v11, %v238_v10  ;;  %v452_v13 = vpop.f32.mrb[3].mxu0  ;;  %v296_v14 = vmax.f32 %v290_v8, 0.0 }
 0x118   : > { %v297_v15 = vmax.f32 %v293_v12, 0.0 }
 0x11a   : > { %v443_v16 = vpack.c.bf16 %v297_v15, %v296_v14 }
 0x11c   : > { %444 = vst [vmem:[%s217_s28] sm:$0xff] %v443_v16  }
 0x11d   : > { %570 = shalt.err (!%p567_p2)
}
 0x11e   : > { %s571_s6 = scalar_lea.hbm %s804_s7, 128  ;;  %s575_s10 = scalar_lea.hbm %s855_s3, 512 }
 0x11f   : > { %p572_p4 = scmp.ne.s32.totalorder %s804_s7, %s571_s6  ;;  %p576_p1 = scmp.lt.u32.totalorder %s804_s7, %s855_s3 }
 0x120   : > { %p577_p3 = scmp.lt.u32.totalorder %s575_s10, %s571_s6  ;;  %p579_p8 = scmp.lt.u32.totalorder %s571_s6, %s804_s7 }
 0x121   : > { %p573_p5 = pnand %p572_p4, %p862_p9 }
 0x122   : > { %p578_p7 = por %p577_p3, %p576_p1 }
 0x123   : > { %p574_p6 = pneg %p573_p5 }
 0x124   : > { %p580_p11 = por %p579_p8, %p578_p7 }
 0x126   : > { %p581_p13 = pnand %p580_p11, %p574_p6 }
 0x128   : > { %584 = shalt.err (!%p581_p13)
}
 0x129   : > { %s649_s28 = smov 64   ;;  %s650_s30 = smov 256  }
 0x12a   : > { %s651_s4 = smov 4  }
 0x12b   : > { %455 = dma.vmem_to_hbm [thread:$0]  (%p862_p9), %s799_s29, 128, %s804_s7, %s309_s11, %s649_s28, %s650_s30, %s651_s4  }
 0x12c PF: > { %p466_p10 = scmp.ge.s32.totalorder %s639_s17, 2  ;;  %s336_s5 = sand.u32 1, %s619_s12  }
 0x12d   : > { %p863_p12 = scmp.ne.s32.totalorder %s860_s27, 0  ;;  %s337_s19 = scalar_lea.sflag [#allocation4], %s336_s5 }
 0x12f   : > { %p462_p0 = pnand %p466_p10, %p863_p12 }
 0x131   : > { %614 = dma.done.wait (!%p462_p0), %s337_s19, 128  }
 0x132   : > { %616 = vsyncadd (!%p462_p0), %s337_s19, 4294967168  ;;  %s19_s17 = sadd.s32 1, %s639_s17   ;;  %s864_s12 = smov %s623_s13 }
 0x133   : > { %p16_p2 = scmp.ge.s32.totalorder %s19_s17, 6   ;;  %s865_s13 = smov %s627_s14 }
 0x134   : > { %s866_s14 = smov %s728_s26  ;;  %s867_s15 = smov %s635_s16 }
 0x135   : > { %s868_s16 = smov %s870_s20  ;;  %18 = sbr.rel (!%p16_p2) target bundleno = 6 (0x6), region = 80 }
 0x13c   :  { %342 = vsyncpa [#allocation3], 1 }
 0x13d   :  { %344 = vsyncpa [#allocation3 + $0x1], 1 }
 0x13e   :  { %345 = vsyncpa [#allocation4], 1 }
 0x13f   :  { %347 = vsyncpa [#allocation4 + $0x1], 1 }

</bundles_post_ra>
